<compile_context>
chip_gen: v7x
topology: tpu7x:2x2x1
jax: 0.10.0
libtpu: 0.0.40
codegen_flags: <defaults>
</compile_context>

<pallas_src>
import functools

import jax
import jax.numpy as jnp
from jax.experimental import pallas as pl
from jax.experimental.pallas import tpu as pltpu

EPS = 1e-5  # nn.BatchNorm2d default eps


# ---------------------------------------------------------------------------
# Pallas kernels
# ---------------------------------------------------------------------------
def _conv_bn_relu_time_kernel(xp_ref, w1_ref, b1_ref, mask_ref, sel_ref,
                              t_ref, wt_ref, bt_ref, gamma_ref, beta_ref,
                              o_ref, *, wp, n_valid):
    """Fused conv3x3(pad=1) -> BatchNorm2d(batch stats) -> ReLU -> + relu(Linear(t)).

    Channel-major layout: xp_ref is (Cin, Lp), the zero-padded input, batch-folded and
    flattened row-major (column = b*Hp*Wp + y*Wp + x).  o_ref is (C, LQ); column
    b*Hp*Wp + y*Wp + x holds the result at pixel (y, x) of batch b (pad / garbage
    columns are zeroed so the second conv's zero padding is already baked in).
    """
    lq = o_ref.shape[1]

    # Build the (9*Cin, LQ) patch matrix from 9 shifted, contiguous lane-slices of the
    # padded activation (in-VMEM im2col -- nothing inflated in HBM), then run the whole
    # 3x3 convolution as ONE 2-D bf16 matmul with f32 accumulation.
    taps = []
    for ky in range(3):
        for kx in range(3):
            off = ky * wp + kx
            taps.append(xp_ref[:, off:off + lq])
    patches = jnp.concatenate(taps, axis=0)                               # (9*Cin, LQ) bf16
    h = jnp.dot(w1_ref[...], patches,
                preferred_element_type=jnp.float32) + b1_ref[...]         # (C, LQ) f32

    # BatchNorm2d, training-mode batch statistics, masked so pad / batch-gap columns do
    # not contaminate the per-channel mean / biased variance.  All stats in f32.
    m = mask_ref[...]                                                     # (1, LQ)
    inv_n = 1.0 / float(n_valid)
    mean = jnp.sum(h * m, axis=1, keepdims=True) * inv_n                  # (C, 1)
    ctr = (h - mean) * m
    var = jnp.sum(ctr * ctr, axis=1, keepdims=True) * inv_n               # (C, 1)
    h = (h - mean) * jax.lax.rsqrt(var + EPS)
    h = h * gamma_ref[...] + beta_ref[...]
    h = jnp.maximum(h, 0.0)

    # Time embedding: relu(Wt @ t + bt), broadcast to every pixel of its batch via a tiny
    # selector matmul (computed once -- this kernel is a single un-gridded invocation).
    te = jnp.dot(wt_ref[...], t_ref[...],
                 preferred_element_type=jnp.float32) + bt_ref[...]        # (C, B)
    te = jnp.maximum(te, 0.0)
    h = h + jnp.dot(te, sel_ref[...], preferred_element_type=jnp.float32)

    # Re-zero pad/garbage columns and store lane-dense (channels on sublanes,
    # batch*spatial on the 128-lane axis), bf16 to halve the intermediate HBM traffic.
    o_ref[...] = (h * m).astype(o_ref.dtype)


def _conv4x4s2_kernel(hs_ref, w2_ref, b2_ref, o_ref, *, sgw):
    """4x4 / stride-2 conv expressed as a stride-1 2x2 conv over 2x2 'super cells'.

    hs_ref: (4*C, Ls) bf16 -- the padded activation packed into 2x2 super-cells,
    channel-major, batch-folded (column = b*Sg*Sg + Y*Sg + X).  Each of the 4 taps is a
    contiguous lane-slice; concatenated they form a (16*C, LQ2) patch matrix and the
    whole conv is ONE 2-D bf16 matmul with f32 accumulation.
    """
    lq = o_ref.shape[1]
    taps = []
    for dy in range(2):
        for dx in range(2):
            off = dy * sgw + dx
            taps.append(hs_ref[:, off:off + lq])
    patches = jnp.concatenate(taps, axis=0)                               # (16*C, LQ2)
    out = jnp.dot(w2_ref[...], patches,
                  preferred_element_type=jnp.float32) + b2_ref[...]       # (C, LQ2) f32
    o_ref[...] = out.astype(o_ref.dtype)


# ---------------------------------------------------------------------------
# MyBlock forward (down-sampling mode, up=False)
# ---------------------------------------------------------------------------
def my_block_forward(x, t, params):
    """x: (B, Cin, H, W), t: (B, time_emb_dim) -> (B, out_ch, H//2, W//2)."""
    B, Cin, H, W = x.shape
    C = params['w1'].shape[0]
    assert H % 2 == 0 and W % 2 == 0

    # ---- flat, padded, channel-major geometry for the fused conv1 kernel -----------
    Hp, Wp = H + 2, W + 2
    NP = Hp * Wp                         # padded pixels per image
    NQ = H * Wp                          # computed columns per image (incl. 2 garbage cols/row)
    LQ = (B - 1) * NP + NQ               # batch-folded output columns
    LP = ((LQ + 2 * Wp + 2 + 7) // 8) * 8    # padded-input columns (covers max tap offset)

    xp = jnp.pad(x, ((0, 0), (0, 0), (1, 1), (1, 1)))                     # (B, Cin, Hp, Wp)
    xp = xp.transpose(1, 0, 2, 3).reshape(Cin, B * NP)                    # channel-major, flat
    xp = jnp.pad(xp, ((0, 0), (0, LP - B * NP))).astype(jnp.bfloat16)

    col = jnp.arange(LQ)
    q = col % NP
    mask = ((q < NQ) & (q % Wp < W)).astype(jnp.float32)[None, :]         # (1, LQ) valid-pixel mask
    sel = (col[None, :] // NP == jnp.arange(B)[:, None]).astype(jnp.float32)  # (B, LQ)

    # conv1 weight as (C, 9*Cin), column order (ky, kx, c), bf16 for the MXU
    w1 = params['w1'].transpose(0, 2, 3, 1).reshape(C, 9 * Cin).astype(jnp.bfloat16)

    h = pl.pallas_call(
        functools.partial(_conv_bn_relu_time_kernel, wp=Wp, n_valid=B * H * W),
        out_shape=jax.ShapeDtypeStruct((C, LQ), jnp.bfloat16),
        compiler_params=pltpu.CompilerParams(vmem_limit_bytes=32 * 1024 * 1024),
    )(xp, w1, params['b1'].reshape(C, 1), mask, sel,
      t.T, params['wt'], params['bt'].reshape(C, 1),
      params['gamma'].reshape(C, 1), params['beta'].reshape(C, 1))
    # NOTE: at production U-Net sizes this call should be tiled over the spatial axis
    # (grid + VMEM sum/sumsq accumulators for the batch-norm stats, per-generation VMEM
    # budget); at these shapes the whole problem fits in VMEM in a single invocation.

    # ---- repack h into stride-1 "2x2 super cells" for the 4x4 / stride-2 conv -------
    # (~10 KiB of channel-last XLA layout glue; no 16x im2col slab, no big transposes)
    Sg = Hp // 2                          # super-grid width
    NS = Sg * Sg
    Ho, Wo = H // 2, W // 2
    LQ2 = (B - 1) * NS + Ho * Sg
    LS = ((LQ2 + Sg + 1 + 7) // 8) * 8

    blocks = []
    for b in range(B):
        run = h[:, b * NP: b * NP + NQ]                                   # (C, NQ); pad cols are zero
        hp = jnp.concatenate(
            [jnp.zeros((C, Wp + 1), h.dtype), run,
             jnp.zeros((C, NP - NQ - Wp - 1), h.dtype)], axis=1)          # (C, Hp*Wp) zero-padded grid
        hp = hp.reshape(C, Hp, Wp)
        hs_b = hp.reshape(C, Sg, 2, Sg, 2).transpose(1, 3, 2, 4, 0).reshape(NS, 4 * C)
        blocks.append(hs_b)
    hs = jnp.concatenate(blocks, axis=0)                                  # (B*NS, 4*C) bf16
    hs = jnp.pad(hs, ((0, LS - B * NS), (0, 0))).T                        # (4*C, LS) channel-major

    # conv2 weight as (C, 16*C) matching the super-cell packing order (dY, dX, dy, dx, c)
    w2 = params['w2'].reshape(C, C, 2, 2, 2, 2).transpose(0, 2, 4, 3, 5, 1)
    w2 = w2.reshape(C, 16 * C).astype(jnp.bfloat16)

    out = pl.pallas_call(
        functools.partial(_conv4x4s2_kernel, sgw=Sg),
        out_shape=jax.ShapeDtypeStruct((C, LQ2), jnp.float32),
        compiler_params=pltpu.CompilerParams(vmem_limit_bytes=32 * 1024 * 1024),
    )(hs, w2, params['b2'].reshape(C, 1))

    # ---- lane-dense (C, positions) result back to NCHW (tiny: ~4 KiB) ---------------
    outs = [out[:, b * NS: b * NS + Ho * Sg].reshape(C, Ho, Sg)[:, :, :Wo]
            for b in range(B)]
    return jnp.stack(outs, axis=0)                                        # (B, C, Ho, Wo)


# ---------------------------------------------------------------------------
# pure-JAX f32 reference (training-mode BatchNorm) for a correctness check
# ---------------------------------------------------------------------------
def _reference_forward(x, t, params):
    dn = ('NCHW', 'OIHW', 'NCHW')
    hi = jax.lax.Precision.HIGHEST
    h = jax.lax.conv_general_dilated(x, params['w1'], (1, 1), ((1, 1), (1, 1)),
                                     dimension_numbers=dn, precision=hi)
    h = h + params['b1'][None, :, None, None]
    mean = jnp.mean(h, axis=(0, 2, 3), keepdims=True)
    var = jnp.mean((h - mean) ** 2, axis=(0, 2, 3), keepdims=True)
    h = (h - mean) * jax.lax.rsqrt(var + EPS)
    h = h * params['gamma'][None, :, None, None] + params['beta'][None, :, None, None]
    h = jnp.maximum(h, 0.0)
    te = jnp.maximum(t @ params['wt'].T + params['bt'], 0.0)
    h = h + te[:, :, None, None]
    out = jax.lax.conv_general_dilated(h, params['w2'], (2, 2), ((1, 1), (1, 1)),
                                       dimension_numbers=dn, precision=hi)
    return out + params['b2'][None, :, None, None]


# ---------------------------------------------------------------------------
# deterministic parameter init (PyTorch-default-like uniform bounds)
# ---------------------------------------------------------------------------
def init_params(key, in_ch, out_ch, time_emb_dim):
    ks = jax.random.split(key, 6)

    def uni(k, shape, fan_in):
        bound = 1.0 / jnp.sqrt(fan_in)
        return jax.random.uniform(k, shape, jnp.float32, -bound, bound)

    return {
        # conv = Conv2d(in_ch, out_ch, 3, padding=1)
        'w1': uni(ks[0], (out_ch, in_ch, 3, 3), in_ch * 9),
        'b1': uni(ks[1], (out_ch,), in_ch * 9),
        # time_mlp = Linear(time_emb_dim, out_ch)  (torch-style (out, in))
        'wt': uni(ks[2], (out_ch, time_emb_dim), time_emb_dim),
        'bt': uni(ks[3], (out_ch,), time_emb_dim),
        # transform = Conv2d(out_ch, out_ch, 4, 2, 1)
        'w2': uni(ks[4], (out_ch, out_ch, 4, 4), out_ch * 16),
        'b2': uni(ks[5], (out_ch,), out_ch * 16),
        # norm = BatchNorm2d(out_ch)
        'gamma': jnp.ones((out_ch,), jnp.float32),
        'beta': jnp.zeros((out_ch,), jnp.float32),
    }


if __name__ == "__main__":
    in_ch, out_ch, time_emb_dim = 4, 8, 32
    B, H, W = 2, 16, 16

    key = jax.random.PRNGKey(0)
    kx, kt, kp = jax.random.split(key, 3)
    x = jax.random.normal(kx, (B, in_ch, H, W), jnp.float32)
    t = jax.random.normal(kt, (B, time_emb_dim), jnp.float32)
    params = init_params(kp, in_ch, out_ch, time_emb_dim)

    out = jax.jit(my_block_forward)(x, t, params)
    out = jax.block_until_ready(out)
    assert out.shape == (B, out_ch, H // 2, W // 2), out.shape
    assert bool(jnp.all(jnp.isfinite(out)))

    ref = _reference_forward(x, t, params)
    err = float(jnp.max(jnp.abs(out - ref)))
    assert err < 5e-2, f"max abs error vs reference: {err}"
    print("KERNEL_OK")
</pallas_src>

<mosaic_0001>
module attributes {stable_mosaic.version = 11 : i64} {
  func.func @_conv_bn_relu_time_kernel(%arg0: memref<4x656xbf16, #tpu.memory_space<vmem>>, %arg1: memref<8x36xbf16, #tpu.memory_space<vmem>>, %arg2: memref<8x1xf32, #tpu.memory_space<vmem>>, %arg3: memref<1x612xf32, #tpu.memory_space<vmem>>, %arg4: memref<2x612xf32, #tpu.memory_space<vmem>>, %arg5: memref<32x2xf32, #tpu.memory_space<vmem>>, %arg6: memref<8x32xf32, #tpu.memory_space<vmem>>, %arg7: memref<8x1xf32, #tpu.memory_space<vmem>>, %arg8: memref<8x1xf32, #tpu.memory_space<vmem>>, %arg9: memref<8x1xf32, #tpu.memory_space<vmem>>, %arg10: memref<8x612xbf16, #tpu.memory_space<vmem>>) attributes {dimension_semantics = [], scalar_prefetch = 0 : i64, scratch_operands = 0 : i64, tpu.core_type = #tpu.core_type<tc>} {
    %c0 = arith.constant 0 : index
    %c0_0 = arith.constant 0 : index
    %0 = vector.load %arg0[%c0, %c0_0] : memref<4x656xbf16, #tpu.memory_space<vmem>>, vector<4x612xbf16>
    %c0_1 = arith.constant 0 : index
    %c1 = arith.constant 1 : index
    %1 = vector.load %arg0[%c0_1, %c1] : memref<4x656xbf16, #tpu.memory_space<vmem>>, vector<4x612xbf16>
    %c0_2 = arith.constant 0 : index
    %c2 = arith.constant 2 : index
    %2 = vector.load %arg0[%c0_2, %c2] : memref<4x656xbf16, #tpu.memory_space<vmem>>, vector<4x612xbf16>
    %c0_3 = arith.constant 0 : index
    %c18 = arith.constant 18 : index
    %3 = vector.load %arg0[%c0_3, %c18] : memref<4x656xbf16, #tpu.memory_space<vmem>>, vector<4x612xbf16>
    %c0_4 = arith.constant 0 : index
    %c19 = arith.constant 19 : index
    %4 = vector.load %arg0[%c0_4, %c19] : memref<4x656xbf16, #tpu.memory_space<vmem>>, vector<4x612xbf16>
    %c0_5 = arith.constant 0 : index
    %c20 = arith.constant 20 : index
    %5 = vector.load %arg0[%c0_5, %c20] : memref<4x656xbf16, #tpu.memory_space<vmem>>, vector<4x612xbf16>
    %c0_6 = arith.constant 0 : index
    %c36 = arith.constant 36 : index
    %6 = vector.load %arg0[%c0_6, %c36] : memref<4x656xbf16, #tpu.memory_space<vmem>>, vector<4x612xbf16>
    %c0_7 = arith.constant 0 : index
    %c37 = arith.constant 37 : index
    %7 = vector.load %arg0[%c0_7, %c37] : memref<4x656xbf16, #tpu.memory_space<vmem>>, vector<4x612xbf16>
    %c0_8 = arith.constant 0 : index
    %c38 = arith.constant 38 : index
    %8 = vector.load %arg0[%c0_8, %c38] : memref<4x656xbf16, #tpu.memory_space<vmem>>, vector<4x612xbf16>
    %9 = tpu.concatenate %0, %1, %2, %3, %4, %5, %6, %7, %8 in 0 : vector<4x612xbf16>, vector<4x612xbf16>, vector<4x612xbf16>, vector<4x612xbf16>, vector<4x612xbf16>, vector<4x612xbf16>, vector<4x612xbf16>, vector<4x612xbf16>, vector<4x612xbf16> -> vector<36x612xbf16>
    %c0_9 = arith.constant 0 : index
    %c0_10 = arith.constant 0 : index
    %10 = vector.load %arg1[%c0_9, %c0_10] : memref<8x36xbf16, #tpu.memory_space<vmem>>, vector<8x36xbf16>
    %cst = arith.constant dense<0.000000e+00> : vector<8x612xf32>
    %11 = tpu.matmul %10, %9, %cst {dimension_numbers = #tpu.dot_dimension_numbers<[1], [0], [0], [1], [0, 0, 1, 1], [], []>} : vector<8x36xbf16>, vector<36x612xbf16>, vector<8x612xf32> -> vector<8x612xf32>
    %c0_11 = arith.constant 0 : index
    %c0_12 = arith.constant 0 : index
    %12 = vector.load %arg2[%c0_11, %c0_12] : memref<8x1xf32, #tpu.memory_space<vmem>>, vector<8x1xf32>
    %13 = vector.broadcast %12 : vector<8x1xf32> to vector<8x612xf32>
    %14 = arith.addf %11, %13 : vector<8x612xf32>
    %c0_13 = arith.constant 0 : index
    %c0_14 = arith.constant 0 : index
    %15 = vector.load %arg3[%c0_13, %c0_14] : memref<1x612xf32, #tpu.memory_space<vmem>>, vector<1x612xf32>
    %16 = vector.broadcast %15 : vector<1x612xf32> to vector<8x612xf32>
    %17 = arith.mulf %14, %16 : vector<8x612xf32>
    %cst_15 = arith.constant dense<0.000000e+00> : vector<8xf32>
    %18 = vector.multi_reduction <add>, %17, %cst_15 [1] : vector<8x612xf32> to vector<8xf32>
    %19 = vector.shape_cast %18 : vector<8xf32> to vector<8x1xf32>
    %cst_16 = arith.constant 0.001953125 : f32
    %20 = vector.broadcast %cst_16 : f32 to vector<8x1xf32>
    %21 = arith.mulf %19, %20 : vector<8x1xf32>
    %22 = vector.broadcast %21 : vector<8x1xf32> to vector<8x612xf32>
    %23 = arith.subf %14, %22 : vector<8x612xf32>
    %24 = vector.broadcast %15 : vector<1x612xf32> to vector<8x612xf32>
    %25 = arith.mulf %23, %24 : vector<8x612xf32>
    %26 = arith.mulf %25, %25 : vector<8x612xf32>
    %cst_17 = arith.constant dense<0.000000e+00> : vector<8xf32>
    %27 = vector.multi_reduction <add>, %26, %cst_17 [1] : vector<8x612xf32> to vector<8xf32>
    %28 = vector.shape_cast %27 : vector<8xf32> to vector<8x1xf32>
    %cst_18 = arith.constant 0.001953125 : f32
    %29 = vector.broadcast %cst_18 : f32 to vector<8x1xf32>
    %30 = arith.mulf %28, %29 : vector<8x1xf32>
    %31 = vector.broadcast %21 : vector<8x1xf32> to vector<8x612xf32>
    %32 = arith.subf %14, %31 : vector<8x612xf32>
    %cst_19 = arith.constant 9.99999974E-6 : f32
    %33 = vector.broadcast %cst_19 : f32 to vector<8x1xf32>
    %34 = arith.addf %30, %33 : vector<8x1xf32>
    %35 = math.rsqrt %34 : vector<8x1xf32>
    %36 = vector.broadcast %35 : vector<8x1xf32> to vector<8x612xf32>
    %37 = arith.mulf %32, %36 : vector<8x612xf32>
    %c0_20 = arith.constant 0 : index
    %c0_21 = arith.constant 0 : index
    %38 = vector.load %arg8[%c0_20, %c0_21] : memref<8x1xf32, #tpu.memory_space<vmem>>, vector<8x1xf32>
    %39 = vector.broadcast %38 : vector<8x1xf32> to vector<8x612xf32>
    %40 = arith.mulf %37, %39 : vector<8x612xf32>
    %c0_22 = arith.constant 0 : index
    %c0_23 = arith.constant 0 : index
    %41 = vector.load %arg9[%c0_22, %c0_23] : memref<8x1xf32, #tpu.memory_space<vmem>>, vector<8x1xf32>
    %42 = vector.broadcast %41 : vector<8x1xf32> to vector<8x612xf32>
    %43 = arith.addf %40, %42 : vector<8x612xf32>
    %cst_24 = arith.constant 0.000000e+00 : f32
    %44 = vector.broadcast %cst_24 : f32 to vector<8x612xf32>
    %45 = arith.maximumf %43, %44 : vector<8x612xf32>
    %c0_25 = arith.constant 0 : index
    %c0_26 = arith.constant 0 : index
    %46 = vector.load %arg6[%c0_25, %c0_26] : memref<8x32xf32, #tpu.memory_space<vmem>>, vector<8x32xf32>
    %c0_27 = arith.constant 0 : index
    %c0_28 = arith.constant 0 : index
    %47 = vector.load %arg5[%c0_27, %c0_28] : memref<32x2xf32, #tpu.memory_space<vmem>>, vector<32x2xf32>
    %cst_29 = arith.constant dense<0.000000e+00> : vector<8x2xf32>
    %48 = tpu.matmul %46, %47, %cst_29 {dimension_numbers = #tpu.dot_dimension_numbers<[1], [0], [0], [1], [0, 0, 1, 1], [], []>} : vector<8x32xf32>, vector<32x2xf32>, vector<8x2xf32> -> vector<8x2xf32>
    %c0_30 = arith.constant 0 : index
    %c0_31 = arith.constant 0 : index
    %49 = vector.load %arg7[%c0_30, %c0_31] : memref<8x1xf32, #tpu.memory_space<vmem>>, vector<8x1xf32>
    %50 = vector.broadcast %49 : vector<8x1xf32> to vector<8x2xf32>
    %51 = arith.addf %48, %50 : vector<8x2xf32>
    %cst_32 = arith.constant 0.000000e+00 : f32
    %52 = vector.broadcast %cst_32 : f32 to vector<8x2xf32>
    %53 = arith.maximumf %51, %52 : vector<8x2xf32>
    %c0_33 = arith.constant 0 : index
    %c0_34 = arith.constant 0 : index
    %54 = vector.load %arg4[%c0_33, %c0_34] : memref<2x612xf32, #tpu.memory_space<vmem>>, vector<2x612xf32>
    %cst_35 = arith.constant dense<0.000000e+00> : vector<8x612xf32>
    %55 = tpu.matmul %53, %54, %cst_35 {dimension_numbers = #tpu.dot_dimension_numbers<[1], [0], [0], [1], [0, 0, 1, 1], [], []>} : vector<8x2xf32>, vector<2x612xf32>, vector<8x612xf32> -> vector<8x612xf32>
    %56 = arith.addf %45, %55 : vector<8x612xf32>
    %57 = vector.broadcast %15 : vector<1x612xf32> to vector<8x612xf32>
    %58 = arith.mulf %56, %57 : vector<8x612xf32>
    %59 = arith.truncf %58 : vector<8x612xf32> to vector<8x612xbf16>
    %c0_36 = arith.constant 0 : index
    %c0_37 = arith.constant 0 : index
    %60 = vector.load %arg10[%c0_36, %c0_37] : memref<8x612xbf16, #tpu.memory_space<vmem>>, vector<8x612xbf16>
    tpu.vector_store %arg10[%c0_36, %c0_37], %59 {strides = array<i32>} : memref<8x612xbf16, #tpu.memory_space<vmem>>, vector<8x612xbf16>,
    return
  }
}

module attributes {stable_mosaic.version = 11 : i64} {
  func.func @_conv4x4s2_kernel(%arg0: memref<32x168xbf16, #tpu.memory_space<vmem>>, %arg1: memref<8x128xbf16, #tpu.memory_space<vmem>>, %arg2: memref<8x1xf32, #tpu.memory_space<vmem>>, %arg3: memref<8x153xf32, #tpu.memory_space<vmem>>) attributes {dimension_semantics = [], scalar_prefetch = 0 : i64, scratch_operands = 0 : i64, tpu.core_type = #tpu.core_type<tc>} {
    %c0 = arith.constant 0 : index
    %c0_0 = arith.constant 0 : index
    %0 = vector.load %arg0[%c0, %c0_0] : memref<32x168xbf16, #tpu.memory_space<vmem>>, vector<32x153xbf16>
    %c0_1 = arith.constant 0 : index
    %c1 = arith.constant 1 : index
    %1 = vector.load %arg0[%c0_1, %c1] : memref<32x168xbf16, #tpu.memory_space<vmem>>, vector<32x153xbf16>
    %c0_2 = arith.constant 0 : index
    %c9 = arith.constant 9 : index
    %2 = vector.load %arg0[%c0_2, %c9] : memref<32x168xbf16, #tpu.memory_space<vmem>>, vector<32x153xbf16>
    %c0_3 = arith.constant 0 : index
    %c10 = arith.constant 10 : index
    %3 = vector.load %arg0[%c0_3, %c10] : memref<32x168xbf16, #tpu.memory_space<vmem>>, vector<32x153xbf16>
    %4 = tpu.concatenate %0, %1, %2, %3 in 0 : vector<32x153xbf16>, vector<32x153xbf16>, vector<32x153xbf16>, vector<32x153xbf16> -> vector<128x153xbf16>
    %c0_4 = arith.constant 0 : index
    %c0_5 = arith.constant 0 : index
    %5 = vector.load %arg1[%c0_4, %c0_5] : memref<8x128xbf16, #tpu.memory_space<vmem>>, vector<8x128xbf16>
    %cst = arith.constant dense<0.000000e+00> : vector<8x153xf32>
    %6 = tpu.matmul %5, %4, %cst {dimension_numbers = #tpu.dot_dimension_numbers<[1], [0], [0], [1], [0, 0, 1, 1], [], []>} : vector<8x128xbf16>, vector<128x153xbf16>, vector<8x153xf32> -> vector<8x153xf32>
    %c0_6 = arith.constant 0 : index
    %c0_7 = arith.constant 0 : index
    %7 = vector.load %arg2[%c0_6, %c0_7] : memref<8x1xf32, #tpu.memory_space<vmem>>, vector<8x1xf32>
    %8 = vector.broadcast %7 : vector<8x1xf32> to vector<8x153xf32>
    %9 = arith.addf %6, %8 : vector<8x153xf32>
    %c0_8 = arith.constant 0 : index
    %c0_9 = arith.constant 0 : index
    %10 = vector.load %arg3[%c0_8, %c0_9] : memref<8x153xf32, #tpu.memory_space<vmem>>, vector<8x153xf32>
    tpu.vector_store %arg3[%c0_8, %c0_9], %9 {strides = array<i32>} : memref<8x153xf32, #tpu.memory_space<vmem>>, vector<8x153xf32>,
    return
  }
}

</mosaic_0001>

<bundles_post_ra>
// kernel: my_block_forward.2
= control target key start
LH: loop header
LB: loop body
LE: loop exit
PB: predicated region body
PF: predicated region fallthrough
CT: control target
= control target key end

     0   :  { %v45_v0 = vlaneseq  ;;  %v1029_v2 = vmov 1983009808   ;;  %s1030_s17 = smov 127   ;;  %s1031_s18 = smov 126   ;;  %v1038_v30 = vmov 0   ;;  %vm235_vm0 = vcmask 1041408   ;;  %s1437_s0 = inlined_call_operand.vmem [shape: bf16[4,656], index: 0, kind: input, shape index: {}]   ;;  %s1438_s7 = inlined_call_operand.vmem [shape: f32[8,1], index: 7, kind: input, shape index: {}]   ;;  %s1439_s2 = inlined_call_operand.vmem [shape: f32[8,1], index: 2, kind: input, shape index: {}]   ;;  %s1440_s5 = inlined_call_operand.vmem [shape: f32[32,2], index: 5, kind: input, shape index: {}]   ;;  %s1441_s1 = inlined_call_operand.vmem [shape: bf16[8,36], index: 1, kind: input, shape index: {}]   ;;  %s1442_s6 = inlined_call_operand.vmem [shape: f32[8,32], index: 6, kind: input, shape index: {}]   ;;  %s1443_s4 = inlined_call_operand.vmem [shape: f32[2,612], index: 4, kind: input, shape index: {}]   ;;  %s1444_s3 = inlined_call_operand.vmem [shape: f32[1,612], index: 3, kind: input, shape index: {}]   ;;  %s1445_s8 = inlined_call_operand.vmem [shape: f32[8,1], index: 8, kind: input, shape index: {}]   ;;  %s1446_s9 = inlined_call_operand.vmem [shape: f32[8,1], index: 9, kind: input, shape index: {}]   ;;  %s1447_s10 = inlined_call_operand.vmem [shape: bf16[8,612], index: 10, kind: output, shape index: {}]  }
   0x1   :  { %v37_v1 = vld [vmem:[%s1437_s0 + $0x8] sm:$0x3]  ;;  %v43_v3 = vunpack.c.l.s4 %v1029_v2  ;;  %v36_v7 = vld [vmem:[%s1437_s0] sm:$0xff]  ;;  %s1032_s19 = smov 110   ;;  %s1033_s20 = smov 109   ;;  %376 = vmatprep.mubr.bf16.mxu0 %v1038_v30  ;;  %417 = vmatprep.mubr.bf16.mxu1 %v1038_v30  ;;  %vm92_vm1 = vcmask 1039360  }
   0x2   :  { %v1100_v4 = vshrl.u32 %v45_v0, 7  ;;  %v74_v6 = vcombine.low %v37_v1, %v37_v1  ;;  %v41_v9 = vcombine.high %v36_v7, %v36_v7  ;;  %s1034_s21 = smov 108   ;;  %v38_v20 = vld [vmem:[%s1437_s0 + $0x8] sm:$0xf]  ;;  %s1035_s24 = smov 92   ;;  %v65_v26 = vcombine.low %v36_v7, %v36_v7  ;;  %1021 = vset.pattern.permute.xlu0 %v1038_v30  ;;  %1020 = vset.pattern.permute.xlu1 %v1038_v30  ;;  %v569_v32 = vld [vmem:[%s1438_s7] sm:$0xff] }
   0x3   :  { %v44_v5 = vunpack.c.0.s8 %v43_v3  ;;  %v189_v22 = vcombine.low %v38_v20, %v38_v20  ;;  %s1036_s0 = smov 91   ;;  %s1037_s25 = smov 90   ;;  %v319_v33 = vld [vmem:[%s1439_s2] sm:$0xff]  ;;  %vm251_vm2 = vcmask 1043456   ;;  %vm110_vm3 = vcmask 1031168  }
   0x4   :  { %vm127_vm4 = vcmask 900096   ;;  %vm262_vm5 = vcmask 1045504   ;;  %vm157_vm6 = vcmask 883712   ;;  %vm183_vm7 = vcmask 752640  }
   0x5   :  { %v1106_v8 = vsub.s32 %v44_v5, %v1100_v4  ;;  %vm142_vm8 = vcmask 891904   ;;  %vm210_vm9 = vcmask 744448   ;;  %vm229_vm10 = vcmask 736256  }
   0x6   :  { %vm325_vm11 = vcmask 293888   ;;  %vm1040_vm12 = vmmov 0   ;;  %vm575_vm13 = vcmask 261120   ;;  %vm678_vm14 = vcmask 15360  }
   0x7   :  { %v81_v10 = vrot.slane %v74_v6, %v1106_v8  ;;  %v1110_v11 = vrot.slane %v36_v7, %v1106_v8  ;;  %v1114_v12 = vrot.slane %v41_v9, %v1106_v8  ;;  %v1117_v13 = vrot.slane %v37_v1, %v1106_v8 }
   0x8   :  { %v169_v21 = vrot.slane %v38_v20, %v1106_v8  ;;  %v196_v24 = vrot.slane %v189_v22, %v1106_v8  ;;  %v72_v27 = vrot.slane %v65_v26, %v1106_v8  ;;  %vm501_vm15 = vcmask 818176  }
   0x9   :  { %90 = vrot.lane.b32.xlu0 %v81_v10, %s1030_s17  ;;  %86 = vrot.lane.b32.xlu1 %v1110_v11, %s1030_s17  ;;  %v1123_v14 = vcombine.high %v1110_v11, %v1110_v11  ;;  %v99_v15 = vcombine.low %v1117_v13, %v1117_v13  ;;  %v98_v16 = vcombine.low %v1114_v12, %v1114_v12 }
   0xa   :  { %v116_v17 = vcombine.low %v81_v10, %v81_v10  ;;  %v97_v18 = vcombine.low %v1110_v11, %v1110_v11  ;;  %v1142_v19 = vcombine.high %v1114_v12, %v1114_v12  ;;  %v170_v23 = vcombine.low %v169_v21, %v169_v21 }
   0xb   :  { %v197_v25 = vcombine.low %v196_v24, %v196_v24  ;;  %v73_v28 = vcombine.high %v72_v27, %v72_v27  ;;  %v115_v29 = vcombine.low %v72_v27, %v72_v27  ;;  %v216_v31 = vcombine.high %v169_v21, %v169_v21 }
   0xd   :  { %88 = vrot.lane.b32.xlu0 %v1123_v14, %s1030_s17  ;;  %106 = vrot.lane.b32.xlu1 %v1114_v12, %s1031_s18 }
  0x11   :  { %108 = vrot.lane.b32.xlu0 %v99_v15, %s1031_s18  ;;  %104 = vrot.lane.b32.xlu1 %v98_v16, %s1031_s18 }
  0x15   :  { %123 = vrot.lane.b32.xlu0 %v1110_v11, %s1032_s19  ;;  %125 = vrot.lane.b32.xlu1 %v116_v17, %s1032_s19 }
  0x19   :  { %121 = vrot.lane.b32.xlu0 %v97_v18, %s1032_s19  ;;  %138 = vrot.lane.b32.xlu1 %v1142_v19, %s1033_s20 }
  0x1d   :  { %140 = vrot.lane.b32.xlu0 %v1117_v13, %s1033_s20  ;;  %153 = vrot.lane.b32.xlu1 %v1123_v14, %s1034_s21 }
  0x21   :  { %155 = vrot.lane.b32.xlu0 %v81_v10, %s1034_s21  ;;  %136 = vrot.lane.b32.xlu1 %v1114_v12, %s1033_s20 }
  0x25   :  { %151 = vrot.lane.b32.xlu0 %v1110_v11, %s1034_s21  ;;  %177 = vrot.lane.b32.xlu1 %v1114_v12, %s1035_s24 }
  0x29   :  { %179 = vrot.lane.b32.xlu0 %v170_v23, %s1035_s24  ;;  %175 = vrot.lane.b32.xlu1 %v98_v16, %s1035_s24 }
  0x2d   :  { %204 = vrot.lane.b32.xlu0 %v1110_v11, %s1036_s0  ;;  %206 = vrot.lane.b32.xlu1 %v197_v25, %s1036_s0 }
  0x31   :  { %202 = vrot.lane.b32.xlu0 %v97_v18, %s1036_s0  ;;  %221 = vrot.lane.b32.xlu1 %v1114_v12, %s1037_s25 }
  0x35   :  { %223 = vrot.lane.b32.xlu0 %v1142_v19, %s1037_s25  ;;  %225 = vrot.lane.b32.xlu1 %v169_v21, %s1037_s25 }
  0x39   :  { %84 = vrot.lane.b32.xlu0 %v73_v28, %s1030_s17  ;;  %82 = vrot.lane.b32.xlu1 %v72_v27, %s1030_s17 }
  0x3d   :  { %102 = vrot.lane.b32.xlu0 %v1110_v11, %s1031_s18  ;;  %100 = vrot.lane.b32.xlu1 %v97_v18, %s1031_s18 }
  0x41   :  { %119 = vrot.lane.b32.xlu0 %v72_v27, %s1032_s19  ;;  %117 = vrot.lane.b32.xlu1 %v115_v29, %s1032_s19 }
  0x45   :  { %134 = vrot.lane.b32.xlu0 %v1123_v14, %s1033_s20  ;;  %149 = vrot.lane.b32.xlu1 %v73_v28, %s1034_s21  ;;  %v566_v28 = vld [vmem:[%s1440_s5 + $0x8] sm:$0xff] }
  0x49   :  { %132 = vrot.lane.b32.xlu0 %v1110_v11, %s1033_s20  ;;  %147 = vrot.lane.b32.xlu1 %v72_v27, %s1034_s21 }
  0x4d   :  { %173 = vrot.lane.b32.xlu0 %v1110_v11, %s1035_s24  ;;  %171 = vrot.lane.b32.xlu1 %v97_v18, %s1035_s24 }
  0x51   :  { %200 = vrot.lane.b32.xlu0 %v72_v27, %s1036_s0  ;;  %198 = vrot.lane.b32.xlu1 %v115_v29, %s1036_s0  ;;  %v565_v27 = vld [vmem:[%s1440_s5] sm:$0xff] }
  0x55   :  { %217 = vrot.lane.b32.xlu0 %v1110_v11, %s1037_s25  ;;  %219 = vrot.lane.b32.xlu1 %v1123_v14, %s1037_s25 }
  0x59   :  { %181 = vrot.lane.b32.xlu0 %v169_v21, %s1035_s24  ;;  %208 = vrot.lane.b32.xlu1 %v196_v24, %s1036_s0 }
  0x5d   :  { %227 = vrot.lane.b32.xlu0 %v216_v31, %s1037_s25  ;;  %572 = vperm.xlu1 %1020, %v569_v32   ;;  %v1002_v32 = vpack.c.bf16 %v566_v28, %v565_v27 }
  0x61   :  { %322 = vperm.xlu0 %1021, %v319_v33  }
  0x7b   :  { %v91_v34 = vpop.permute.xlu0 %90  ;;  %v1206_v35 = vpop.permute.xlu1 %86 }
  0x7c   :  { %v250_v38 = vsel %vm235_vm0, %v1117_v13, %v91_v34 }
  0x7f   :  { %v89_v36 = vpop.permute.xlu0 %88  ;;  %v107_v37 = vpop.permute.xlu1 %106 }
  0x80   :  { %v96_v41 = vsel %vm92_vm1, %v89_v36, %v91_v34  ;;  %v95_v47 = vsel %vm92_vm1, %v1206_v35, %v89_v36  ;;  %v1039_v36 = vmov 0.0|0.0  }
  0x81   :  { %v247_v44 = vsel %vm235_vm0, %v1142_v19, %v96_v41  ;;  %v244_v53 = vsel %vm235_vm0, %v1114_v12, %v95_v47 }
  0x83   :  { %v109_v39 = vpop.permute.xlu0 %108  ;;  %v1210_v40 = vpop.permute.xlu1 %104 }
  0x84   :  { %v261_v42 = vsel %vm251_vm2, %v250_v38, %v109_v39  ;;  %v114_v43 = vsel %vm110_vm3, %v107_v37, %v109_v39  ;;  %v113_v51 = vsel %vm110_vm3, %v1210_v40, %v107_v37  ;;  %v567_v37 = vld [vmem:[%s1440_s5 + $0x10] sm:$0xff]  ;;  %v568_v38 = vld [vmem:[%s1440_s5 + $0x18] sm:$0xff]  ;;  %v1298_v39 = vld [vmem:[%s1441_s1] sm:$0xf] }
  0x85   :  { %v259_v50 = vsel %vm251_vm2, %v247_v44, %v114_v43  ;;  %v257_v57 = vsel %vm251_vm2, %v244_v53, %v113_v51  ;;  %v1005_v41 = vpack.c.bf16 %v568_v38, %v567_v37 }
  0x87   :  { %v124_v45 = vpop.permute.xlu0 %123  ;;  %v126_v46 = vpop.permute.xlu1 %125 }
  0x88   :  { %v131_v48 = vsel %vm127_vm4, %v124_v45, %v126_v46  ;;  %v1221_v49 = vsel %vm262_vm5, %v261_v42, %v126_v46  ;;  %v1041_v42 = vmov 0.0  }
  0x89   :  { %v273_v52 = vsel %vm262_vm5, %v259_v50, %v131_v48  ;;  %v564_v50 = vld [vmem:[%s1442_s6] sm:$0xff] }
  0x8a   :  { %385 = vmatprep.subr.bf16.mxu1 %v273_v52 }
  0x8b   :  { %v1229_v54 = vpop.permute.xlu0 %121  ;;  %v139_v55 = vpop.permute.xlu1 %138 }
  0x8c   :  { %v130_v56 = vsel %vm127_vm4, %v1229_v54, %v124_v45 }
  0x8d   :  { %v270_v58 = vsel %vm262_vm5, %v257_v57, %v130_v56 }
  0x8e   :  { %386 = vmatpush1.bf16.msra.mxu1 %v270_v58 }
  0x8f   :  { %v1235_v59 = vpop.permute.xlu0 %140  ;;  %v154_v60 = vpop.permute.xlu1 %153 }
  0x90   :  { %v146_v6 = vsel %vm142_vm8, %v139_v55, %v1235_v59 }
  0x93   :  { %v1237_v61 = vpop.permute.xlu0 %155  ;;  %v1239_v62 = vpop.permute.xlu1 %136 }
  0x94   :  { %v161_v3 = vsel %vm157_vm6, %v154_v60, %v1237_v61  ;;  %v145_v18 = vsel %vm142_vm8, %v1239_v62, %v139_v55 }
  0x95   :  { %v289_v7 = vsel %vm235_vm0, %v146_v6, %v161_v3 }
  0x97   :  { %v1241_v63 = vpop.permute.xlu0 %151  ;;  %v178_v0 = vpop.permute.xlu1 %177 }
  0x98   :  { %v160_v12 = vsel %vm157_vm6, %v1241_v63, %v154_v60 }
  0x99   :  { %v286_v19 = vsel %vm235_vm0, %v145_v18, %v160_v12 }
  0x9b   :  { %v1243_v1 = vpop.permute.xlu0 %179  ;;  %v1245_v2 = vpop.permute.xlu1 %175 }
  0x9c   :  { %v187_v5 = vsel %vm183_vm7, %v178_v0, %v1243_v1  ;;  %v186_v16 = vsel %vm183_vm7, %v1245_v2, %v178_v0 }
  0x9d   :  { %v300_v15 = vsel %vm251_vm2, %v289_v7, %v187_v5  ;;  %v298_v23 = vsel %vm251_vm2, %v286_v19, %v186_v16 }
  0x9f   :  { %v205_v9 = vpop.permute.xlu0 %204  ;;  %v1254_v10 = vpop.permute.xlu1 %206 }
  0xa0   :  { %v214_v13 = vsel %vm210_vm9, %v205_v9, %v1254_v10 }
  0xa1   :  { %v313_v17 = vsel %vm262_vm5, %v300_v15, %v214_v13 }
  0xa2   :  { %387 = vmatprep.subr.bf16.mxu1 %v313_v17 }
  0xa3   :  { %v1267_v20 = vpop.permute.xlu0 %202  ;;  %v1269_v21 = vpop.permute.xlu1 %221 }
  0xa4   :  { %v213_v22 = vsel %vm210_vm9, %v1267_v20, %v205_v9 }
  0xa5   :  { %v310_v24 = vsel %vm262_vm5, %v298_v23, %v213_v22 }
  0xa6   :  { %388 = vmatpush1.bf16.msra.mxu1 %v310_v24 }
  0xa7   :  { %v224_v25 = vpop.permute.xlu0 %223  ;;  %v1275_v26 = vpop.permute.xlu1 %225 }
  0xa8   :  { %v232_v29 = vsel %vm229_vm10, %v1269_v21, %v224_v25  ;;  %v233_v30 = vsel %vm229_vm10, %v224_v25, %v1275_v26 }
  0xa9   :  { %945 = vmatprep.subr.msk.bf16.mxu1 %vm235_vm0, %v233_v30  ;;  %v336_v31 = vsel %vm235_vm0, %v232_v29, 0 }
  0xaa   :  { %390 = vmatpush1.bf16.msra.mxu1 %v336_v31 }
  0xab   :  { %v85_v33 = vpop.permute.xlu0 %84  ;;  %v83_v34 = vpop.permute.xlu1 %82  ;;  %1001 = vmatprep.subr.bf16.mxu1 %v1039_v36 }
  0xac   :  { %v94_v45 = vsel %vm92_vm1, %v85_v33, %v1206_v35  ;;  %v93_v46 = vsel %vm92_vm1, %v83_v34, %v85_v33  ;;  %v292_v33 = vsel %vm235_vm0, %v1235_v59, %v1237_v61 }
  0xad   :  { %946 = vmatmul.mubr.msk.bf16.vlgmr.msra.gmra.mrb[0].mxu1 %vm325_vm11, %v1298_v39  ;;  %v241_v51 = vsel %vm235_vm0, %v1123_v14, %v94_v45  ;;  %v238_v52 = vsel %vm235_vm0, %v1110_v11, %v93_v46 }
  0xae   :  { %1003 = vmatpush3.bf16.msra.mxu1 %v1002_v32  ;;  %993 = vmatprep.mubr.msk.f32.mxu1 %vm1040_vm12, %v1041_v42 }
  0xaf   :  { %v103_v43 = vpop.permute.xlu0 %102  ;;  %v101_v44 = vpop.permute.xlu1 %100  ;;  %1004 = vmatprep.subr.bf16.mxu1 %v1039_v36 }
  0xb0   :  { %v112_v47 = vsel %vm110_vm3, %v103_v43, %v1210_v40  ;;  %v111_v48 = vsel %vm110_vm3, %v101_v44, %v103_v43 }
  0xb1   :  { %v255_v56 = vsel %vm251_vm2, %v241_v51, %v112_v47  ;;  %v253_v57 = vsel %vm251_vm2, %v238_v52, %v111_v48 }
  0xb2   :  { %1006 = vmatpush3.bf16.msra.mxu1 %v1005_v41 }
  0xb3   :  { %v120_v35 = vpop.permute.xlu0 %119  ;;  %v118_v53 = vpop.permute.xlu1 %117 }
  0xb4   :  { %v129_v55 = vsel %vm127_vm4, %v120_v35, %v1229_v54  ;;  %v128_v40 = vsel %vm127_vm4, %v118_v53, %v120_v35  ;;  %v474_v35 = vsub.s32 1, %v1100_v4  ;;  %v466_v53 = vld [vmem:[%s1444_s3] sm:$0x1f] }
  0xb5   :  { %v267_v58 = vsel %vm262_vm5, %v255_v56, %v129_v55  ;;  %v264_v60 = vsel %vm262_vm5, %v253_v57, %v128_v40  ;;  %994 = vmatmul.mubr.msk.f32.vlgmr.msra.gmra.mrb[4].mxu1 %vm575_vm13, %v564_v50  ;;  %v478_v40 = vsub.s32 2, %v1100_v4 }
  0xb6   :  { %344 = vmatprep.subr.bf16.mxu0 %v267_v58  ;;  %756 = vmatprep.mubr.f32.mxu1 %v1041_v42  ;;  %v1395_v58 = vrot.slane %v466_v53, %v474_v35 }
  0xb7   :  { %v135_v11 = vpop.permute.xlu0 %134  ;;  %345 = vmatpush1.bf16.msra.mxu0 %v264_v60  ;;  %v150_v14 = vpop.permute.xlu1 %149 }
  0xb8   :  { %v144_v6 = vsel %vm142_vm8, %v135_v11, %v1239_v62  ;;  %v159_v7 = vsel %vm157_vm6, %v150_v14, %v1241_v63 }
  0xb9   :  { %v283_v16 = vsel %vm235_vm0, %v144_v6, %v159_v7  ;;  %v482_v7 = vsub.s32 3, %v1100_v4 }
  0xbb   :  { %v133_v0 = vpop.permute.xlu0 %132  ;;  %v148_v3 = vpop.permute.xlu1 %147 }
  0xbc   :  { %v143_v9 = vsel %vm142_vm8, %v133_v0, %v135_v11  ;;  %v158_v12 = vsel %vm157_vm6, %v148_v3, %v150_v14  ;;  %v1397_v3 = vrot.slane %v466_v53, %v478_v40 }
  0xbd   :  { %v280_v17 = vsel %vm235_vm0, %v143_v9, %v158_v12  ;;  %v486_v9 = vsub.s32 4, %v1100_v4 }
  0xbf   :  { %v174_v54 = vpop.permute.xlu0 %173  ;;  %v172_v5 = vpop.permute.xlu1 %171 }
  0xc0   :  { %v185_v13 = vsel %vm183_vm7, %v174_v54, %v1245_v2  ;;  %v184_v15 = vsel %vm183_vm7, %v172_v5, %v174_v54 }
  0xc1   :  { %v296_v22 = vsel %vm251_vm2, %v283_v16, %v185_v13  ;;  %v294_v23 = vsel %vm251_vm2, %v280_v17, %v184_v15  ;;  %v1404_v16 = vrot.slane %v466_v53, %v482_v7  ;;  %v1406_v17 = vrot.slane %v466_v53, %v486_v9 }
  0xc3   :  { %v201_v18 = vpop.permute.xlu0 %200  ;;  %v199_v19 = vpop.permute.xlu1 %198 }
  0xc4   :  { %v212_v62 = vsel %vm210_vm9, %v201_v18, %v1267_v20  ;;  %v211_v63 = vsel %vm210_vm9, %v199_v19, %v201_v18 }
  0xc5   :  { %v307_v24 = vsel %vm262_vm5, %v296_v22, %v212_v62  ;;  %v304_v2 = vsel %vm262_vm5, %v294_v23, %v211_v63 }
  0xc6   :  { %346 = vmatprep.subr.bf16.mxu0 %v307_v24 }
  0xc7   :  { %v218_v25 = vpop.permute.xlu0 %217  ;;  %347 = vmatpush1.bf16.msra.mxu0 %v304_v2  ;;  %v220_v27 = vpop.permute.xlu1 %219 }
  0xc8   :  { %v230_v28 = vsel %vm229_vm10, %v218_v25, %v220_v27  ;;  %v231_v29 = vsel %vm229_vm10, %v220_v27, %v1269_v21 }
  0xc9   :  { %943 = vmatprep.subr.msk.bf16.mxu0 %vm235_vm0, %v231_v29  ;;  %v330_v20 = vsel %vm235_vm0, %v230_v28, 0  ;;  %v537_v28 = vld [vmem:[%s1445_s8] sm:$0xff] }
  0xcb   :  { %v182_v30 = vpop.permute.xlu0 %181  ;;  %349 = vmatpush1.bf16.msra.mxu0 %v330_v20  ;;  %v209_v32 = vpop.permute.xlu1 %208 }
  0xcc   :  { %v188_v31 = vsel %vm183_vm7, %v1243_v1, %v182_v30  ;;  %975 = vmatprep.subr.bf16.mxu0 %v1041_v42  ;;  %v215_v34 = vsel %vm210_vm9, %v1254_v10, %v209_v32  ;;  %v949_v10 = vld.sshfl [vmem:[%s1443_s4 + $0x8] sm:$0x3 pattern:$0x76325410] }
  0xcd   :  { %v302_v21 = vsel %vm251_vm2, %v292_v33, %v188_v31 }
  0xce   :  { %944 = vmatmul.mubr.msk.bf16.vlgmr.msra.gmra.mrb[0].mxu0 %vm325_vm11, %v1298_v39  ;;  %v316_v36 = vsel %vm262_vm5, %v302_v21, %v215_v34 }
  0xcf   :  { %976 = vmatpush3.bf16.msra.mxu0 %v1221_v49  ;;  %981 = vmatprep.mubr.msk.bf16.mxu0 %vm1040_vm12, %v1041_v42  ;;  %v228_v1 = vpop.permute.xlu0 %227  ;;  %v650_v49 = vld [vmem:[%s1443_s4] sm:$0xff] }
  0xd0   :  { %977 = vmatprep.subr.bf16.mxu0 %v1041_v42  ;;  %v234_v59 = vsel %vm229_vm10, %v1275_v26, %v228_v1  ;;  %v661_v26 = vrot.slane %v650_v49, %v1106_v8  ;;  %v654_v37 = vcombine.high %v650_v49, %v650_v49 }
  0xd1   :  { %v342_v61 = vsel %vm235_vm0, %v234_v59, 0 }
  0xd2   :  { %v669_v38 = vcombine.high %v661_v26, %v661_v26  ;;  %v668_v41 = vrot.slane %v654_v37, %v1106_v8  ;;  %v470_v8 = vsub.s32 0, %v1100_v4 }
  0xd3   :  { %978 = vmatpush3.bf16.msra.mxu0 %v316_v36 }
  0xd4   :  { %979 = vmatprep.subr.bf16.mxu0 %v1041_v42  ;;  %950 = vmatprep.subr.msk.mxu1 %vm235_vm0, %v669_v38  ;;  %v1393_v57 = vrot.slane %v466_v53, %v470_v8 }
  0xd5   :  { %951 = vmatpush1.msk.msra.mxu1 %vm235_vm0, %v661_v26 }
  0xd7   :  { %980 = vmatpush3.bf16.msra.mxu0 %v342_v61 }
  0xd8   :  { %996 = vmatprep.subr.mxu0 %v1041_v42 }
  0xda   :  { %982 = vmatmul.mubr.msk.bf16.vlgmr.msra.gmra.mrb[4].mxu0 %vm325_vm11, %v1298_v39  ;;  %v670_v39 = vcombine.high %v668_v41, %v668_v41 }
  0xdb   :  { %998 = vmatprep.mubr.msk.f32.mxu0 %vm1040_vm12, %v1041_v42  ;;  %997 = vmatpush3.msk.msra.mxu0 %vm235_vm0, %v949_v10 }
  0xdc   :  { %953 = vmatprep.subr.msk.mxu1 %vm235_vm0, %v670_v39  ;;  %v573_v47 = vpop.permute.xlu1 %572 }
  0xe0   :  { %v323_v55 = vpop.permute.xlu0 %322 }
 0x180   :  { %v419_v43 = vpop.f32.mrb[0].mxu1 }
 0x181   :  { %v421_v44 = vpop.f32.mrb[1].mxu1  ;;  %v420_v6 = vadd.f32 %v419_v43, %v323_v55 }
 0x182   :  { %v423_v45 = vpop.f32.mrb[2].mxu1  ;;  %v422_v15 = vadd.f32 %v421_v44, %v323_v55 }
 0x183   :  { %v424_v46 = vpop.f32.mrb[3].mxu1  ;;  %v495_v13 = vmul.f32 %v1397_v3, %v420_v6 }
 0x184   :  { %v496_v19 = vmul.f32 %v1404_v16, %v422_v15 }
 0x188   :  { %v645_v48 = vpop.f32.mrb[4].mxu1 }
 0x189   :  { %v646_v50 = vadd.f32 %v645_v48, %v573_v47  ;;  %v995_v51 = vpop.f32.mrb[5].mxu1  ;;  %v548_v48 = vld [vmem:[%s1446_s9] sm:$0xff] }
 0x18b   :  { %v649_v52 = vmax.f32 %v646_v50, 0.0 }
 0x18d   :  { %952 = vmatmul.mubr.msk.f32.vlgmr.msra.gmra.mrb[6].mxu1 %vm678_vm14, %v649_v52  ;;  %999 = vmatmul.mubr.msk.f32.vlgmr.msra.gmra.mrb[8].mxu0 %vm678_vm14, %v649_v52 }
 0x18e   :  { %954 = vmatpush1.msk.msra.mxu1 %vm235_vm0, %v668_v41  ;;  %827 = vmatprep.mubr.f32.mxu1 %v1041_v42  ;;  %vm937_vm0 = vcmask 814080  }
 0x191   :  { %955 = vmatmul.mubr.msk.f32.vlgmr.msra.gmra.mrb[8].mxu1 %vm678_vm14, %v649_v52 }
 0x1a1   :  { %v378_v56 = vpop.f32.mrb[0].mxu0 }
 0x1a2   :  { %v379_v60 = vadd.f32 %v378_v56, %v323_v55  ;;  %v380_v11 = vpop.f32.mrb[1].mxu0 }
 0x1a3   :  { %v381_v42 = vadd.f32 %v380_v11, %v323_v55  ;;  %v382_v14 = vpop.f32.mrb[2].mxu0 }
 0x1a4   :  { %v383_v0 = vpop.f32.mrb[3].mxu0  ;;  %v493_v54 = vmul.f32 %v1393_v57, %v379_v60 }
 0x1a5   :  { %v494_v5 = vmul.f32 %v1395_v58, %v381_v42 }
 0x1a7   :  { %v498_v12 = vadd.f32 %v494_v5, %v493_v54 }
 0x1a9   :  { %v499_v18 = vadd.f32 %v498_v12, %v495_v13 }
 0x1ab   :  { %v500_v4 = vadd.f32 %v499_v18, %v496_v19 }
 0x1ad   :  { %v460_v62 = vpop.f32.mrb[4].mxu0 }
 0x1ae   :  { %v461_v63 = vadd.f32 %v460_v62, %v323_v55  ;;  %v983_v22 = vpop.f32.mrb[5].mxu0 }
 0x1af   :  { %v463_v23 = vpop.f32.mrb[6].mxu0 }
 0x1b0   :  { %v497_v24 = vmul.f32 %v1406_v17, %v461_v63  ;;  %v984_v2 = vpop.f32.mrb[7].mxu0 }
 0x1b2   :  { %v502_v25 = vsel %vm501_vm15, %v497_v24, 0.0 }
 0x1b3   :  { %v503_v27 = vadd.f32 %v502_v25, %v500_v4 }
 0x1b5   :  { %504 = vadd.xlane.f32.xlu1 %v503_v27 }
 0x1c6   :  { %540 = vperm.xlu1 %1020, %v537_v28  }
 0x242   :  { %v505_v29 = vpop.xlane.xlu1 %504 }
 0x243   :  { %v506_v20 = vmul.f32 0.001953125, %v505_v29 }
 0x245   :  { %v507_v30 = vsub.f32 %v379_v60, %v506_v20  ;;  %v508_v31 = vsub.f32 %v381_v42, %v506_v20  ;;  %v509_v32 = vsub.f32 %v420_v6, %v506_v20  ;;  %v510_v33 = vsub.f32 %v422_v15, %v506_v20 }
 0x246   :  { %v511_v21 = vsub.f32 %v461_v63, %v506_v20  ;;  %v541_v14 = vpop.permute.xlu1 %540 }
 0x247   :  { %v512_v34 = vmul.f32 %v507_v30, %v1393_v57  ;;  %v513_v1 = vmul.f32 %v508_v31, %v1395_v58  ;;  %v514_v36 = vmul.f32 %v509_v32, %v1397_v3  ;;  %v515_v61 = vmul.f32 %v510_v33, %v1404_v16 }
 0x248   :  { %v516_v59 = vmul.f32 %v511_v21, %v1406_v17 }
 0x249   :  { %v517_v49 = vmul.f32 %v512_v34, %v512_v34  ;;  %v518_v10 = vmul.f32 %v513_v1, %v513_v1  ;;  %v519_v26 = vmul.f32 %v514_v36, %v514_v36  ;;  %v520_v41 = vmul.f32 %v515_v61, %v515_v61 }
 0x24a   :  { %v521_v38 = vmul.f32 %v516_v59, %v516_v59 }
 0x24b   :  { %v522_v37 = vadd.f32 %v518_v10, %v517_v49 }
 0x24c   :  { %v525_v44 = vsel %vm501_vm15, %v521_v38, 0.0 }
 0x24d   :  { %v523_v39 = vadd.f32 %v522_v37, %v519_v26 }
 0x24f   :  { %v524_v43 = vadd.f32 %v523_v39, %v520_v41 }
 0x251   :  { %v526_v45 = vadd.f32 %v525_v44, %v524_v43 }
 0x253   :  { %527 = vadd.xlane.f32.xlu0 %v526_v45 }
 0x260   :  { %v758_v46 = vpop.f32.mrb[6].mxu1  ;;  %v900_v47 = vpop.f32.mrb[8].mxu0 }
 0x261   :  { %v760_v50 = vpop.f32.mrb[7].mxu1  ;;  %v1000_v51 = vpop.f32.mrb[9].mxu0 }
 0x264   :  { %v829_v52 = vpop.f32.mrb[8].mxu1 }
 0x265   :  { %v831_v8 = vpop.f32.mrb[9].mxu1 }
 0x269   :  { %551 = vperm.xlu0 %1021, %v548_v48  }
 0x2e0   :  { %v528_v35 = vpop.xlane.xlu0 %527 }
 0x2e1   :  { %v529_v53 = vmul.f32 0.001953125, %v528_v35 }
 0x2e3   :  { %v530_v55 = vadd.f32 1e-05, %v529_v53 }
 0x2e5   :  { %1027 = vrsqrt.f32 %v530_v55 }
 0x2e8   :  { %v552_v9 = vpop.permute.xlu0 %551 }
 0x2ef   :  { %v1028_v40 = vpop.eup %1027 }
 0x2f0   :  { %v532_v56 = vmul.f32 %v1028_v40, %v507_v30  ;;  %v533_v60 = vmul.f32 %v1028_v40, %v508_v31  ;;  %v534_v11 = vmul.f32 %v1028_v40, %v509_v32  ;;  %v535_v42 = vmul.f32 %v1028_v40, %v510_v33 }
 0x2f1   :  { %v536_v0 = vmul.f32 %v1028_v40, %v511_v21 }
 0x2f2   :  { %v543_v54 = vmul.f32 %v541_v14, %v532_v56  ;;  %v544_v5 = vmul.f32 %v541_v14, %v533_v60  ;;  %v545_v6 = vmul.f32 %v541_v14, %v534_v11  ;;  %v546_v7 = vmul.f32 %v541_v14, %v535_v42 }
 0x2f3   :  { %v547_v12 = vmul.f32 %v541_v14, %v536_v0 }
 0x2f4   :  { %v554_v13 = vadd.f32 %v552_v9, %v543_v54  ;;  %v555_v15 = vadd.f32 %v552_v9, %v544_v5  ;;  %v556_v18 = vadd.f32 %v552_v9, %v545_v6  ;;  %v557_v19 = vadd.f32 %v552_v9, %v546_v7 }
 0x2f5   :  { %v558_v62 = vadd.f32 %v552_v9, %v547_v12 }
 0x2f6   :  { %v559_v63 = vmax.f32 %v554_v13, 0.0  ;;  %v560_v22 = vmax.f32 %v555_v15, 0.0  ;;  %v561_v23 = vmax.f32 %v556_v18, 0.0  ;;  %v562_v24 = vmax.f32 %v557_v19, 0.0 }
 0x2f7   :  { %v563_v2 = vmax.f32 %v558_v62, 0.0 }
 0x2f8   :  { %v904_v4 = vadd.f32 %v758_v46, %v559_v63  ;;  %v905_v25 = vadd.f32 %v760_v50, %v560_v22  ;;  %v906_v27 = vadd.f32 %v829_v52, %v561_v23  ;;  %v907_v28 = vadd.f32 %v831_v8, %v562_v24 }
 0x2f9   :  { %v908_v29 = vadd.f32 %v900_v47, %v563_v2 }
 0x2fa   :  { %v909_v20 = vmul.f32 %v904_v4, %v1393_v57  ;;  %v910_v30 = vmul.f32 %v905_v25, %v1395_v58  ;;  %v911_v31 = vmul.f32 %v906_v27, %v1397_v3  ;;  %v912_v32 = vmul.f32 %v907_v28, %v1404_v16 }
 0x2fb   :  { %v913_v33 = vmul.f32 %v908_v29, %v1406_v17 }
 0x2fc   :  { %v961_v21 = vpack.c.bf16 %v910_v30, %v909_v20  ;;  %v962_v34 = vpack.c.bf16 %v912_v32, %v911_v31 }
 0x2fd   :  { %v963_v1 = vpack.c.bf16 %v913_v33, %v913_v33 }
 0x2fe   :  { %935 = vst [vmem:[%s1447_s10] sm:$0xff] %v961_v21  ;;  %936 = vst [vmem:[%s1447_s10 + $0x8] sm:$0xff] %v962_v34 }
 0x2ff   :  { %938 = vst.msk [vmem:[%s1447_s10 + $0x10] sm:$0xf] %vm937_vm0, %v963_v1 }

// kernel: my_block_forward.3
= control target key start
LH: loop header
LB: loop body
LE: loop exit
PB: predicated region body
PF: predicated region fallthrough
CT: control target
= control target key end

     0   :  { %s154_s16 = smov 127   ;;  %s155_s21 = smov 119   ;;  %v156_v4 = vmov 0   ;;  %vm47_vm0 = vcmask 1039360   ;;  %vm62_vm1 = vcmask 973824   ;;  %vm77_vm2 = vcmask 965632   ;;  %s202_s0 = inlined_call_operand.vmem [shape: bf16[32,168], index: 0, kind: input, shape index: {}]   ;;  %s203_s2 = inlined_call_operand.vmem [shape: f32[8,1], index: 2, kind: input, shape index: {}]   ;;  %s204_s1 = inlined_call_operand.vmem [shape: bf16[8,128], index: 1, kind: input, shape index: {}]   ;;  %s205_s3 = inlined_call_operand.vmem [shape: f32[8,153], index: 3, kind: output, shape index: {}]  }
   0x1   :  { %v148_v0 = vld [vmem:[%s202_s0 + $0x10] ss:$8 sps:$4 sm:$0xff]   ;;  %v150_v1 = vld [vmem:[%s202_s0] ss:$8 sps:$4 sm:$0xff]   ;;  %v152_v2 = vld [vmem:[%s202_s0 + $0x14] ss:$8 sps:$4 sm:$0xff]   ;;  %123 = vmatprep.mubr.bf16.mxu0 %v156_v4  ;;  %147 = vset.pattern.permute.xlu0 %v156_v4 }
   0x2   :  { %43 = vrot.lane.b32.xlu1 %v148_v0, %s154_s16  ;;  %v153_v3 = vld [vmem:[%s202_s0 + $0x4] ss:$8 sps:$4 sm:$0xff]   ;;  %39 = vrot.lane.b32.xlu0 %v150_v1, %s154_s16  ;;  %s157_s22 = smov 118   ;;  %v84_v24 = vld [vmem:[%s204_s1] sm:$0xf]  ;;  %vm133_vm3 = vcmask 203776  }
   0x3   :  { %91 = vmatprep.subr.bf16.mxu0 %v153_v3  ;;  %v85_v5 = vld [vmem:[%s203_s2] sm:$0xff] }
   0x4   :  { %92 = vmatpush1.bf16.msra.mxu0 %v150_v1 }
   0x5   :  { %93 = vmatprep.subr.bf16.mxu0 %v152_v2 }
   0x6   :  { %45 = vrot.lane.b32.xlu1 %v152_v2, %s154_s16  ;;  %41 = vrot.lane.b32.xlu0 %v153_v3, %s154_s16 }
   0x8   :  { %94 = vmatpush1.bf16.msra.mxu0 %v148_v0 }
   0xa   :  { %56 = vrot.lane.b32.xlu1 %v153_v3, %s155_s21  ;;  %54 = vrot.lane.b32.xlu0 %v150_v1, %s155_s21 }
   0xe   :  { %60 = vrot.lane.b32.xlu1 %v152_v2, %s155_s21  ;;  %58 = vrot.lane.b32.xlu0 %v148_v0, %s155_s21 }
  0x12   :  { %71 = vrot.lane.b32.xlu1 %v153_v3, %s157_s22  ;;  %69 = vrot.lane.b32.xlu0 %v150_v1, %s157_s22 }
  0x16   :  { %75 = vrot.lane.b32.xlu1 %v152_v2, %s157_s22  ;;  %73 = vrot.lane.b32.xlu0 %v148_v0, %s157_s22 }
  0x1a   :  { %88 = vperm.xlu0 %147, %v85_v5  }
  0x74   :  { %v44_v6 = vpop.permute.xlu1 %43  ;;  %v40_v7 = vpop.permute.xlu0 %39 }
  0x78   :  { %v46_v8 = vpop.permute.xlu1 %45  ;;  %v42_v9 = vpop.permute.xlu0 %41 }
  0x79   :  { %95 = vmatprep.subr.bf16.mxu0 %v42_v9  ;;  %v48_v10 = vsel %vm47_vm0, %v40_v7, %v42_v9  ;;  %v49_v13 = vsel %vm47_vm0, %v44_v6, %v46_v8 }
  0x7a   :  { %96 = vmatpush1.bf16.msra.mxu0 %v48_v10 }
  0x7b   :  { %97 = vmatprep.subr.bf16.mxu0 %v46_v8 }
  0x7c   :  { %v57_v11 = vpop.permute.xlu1 %56  ;;  %v55_v12 = vpop.permute.xlu0 %54 }
  0x7d   :  { %v63_v14 = vsel %vm62_vm1, %v55_v12, %v57_v11 }
  0x7e   :  { %98 = vmatpush1.bf16.msra.mxu0 %v49_v13 }
  0x7f   :  { %99 = vmatprep.subr.bf16.mxu0 %v57_v11 }
  0x80   :  { %v61_v15 = vpop.permute.xlu1 %60  ;;  %v59_v16 = vpop.permute.xlu0 %58 }
  0x81   :  { %v64_v17 = vsel %vm62_vm1, %v59_v16, %v61_v15 }
  0x82   :  { %100 = vmatpush1.bf16.msra.mxu0 %v63_v14 }
  0x83   :  { %101 = vmatprep.subr.bf16.mxu0 %v61_v15 }
  0x84   :  { %v72_v18 = vpop.permute.xlu1 %71  ;;  %v70_v19 = vpop.permute.xlu0 %69 }
  0x85   :  { %v78_v20 = vsel %vm77_vm2, %v70_v19, %v72_v18 }
  0x86   :  { %102 = vmatpush1.bf16.msra.mxu0 %v64_v17 }
  0x87   :  { %103 = vmatprep.subr.bf16.mxu0 %v72_v18 }
  0x88   :  { %v76_v21 = vpop.permute.xlu1 %75  ;;  %v74_v22 = vpop.permute.xlu0 %73 }
  0x89   :  { %v79_v23 = vsel %vm77_vm2, %v74_v22, %v76_v21 }
  0x8a   :  { %104 = vmatpush1.bf16.msra.mxu0 %v78_v20 }
  0x8b   :  { %105 = vmatprep.subr.bf16.mxu0 %v76_v21 }
  0x8e   :  { %106 = vmatpush1.bf16.msra.mxu0 %v79_v23 }
  0x91   :  { %124 = vmatmul.mubr.bf16.vlgmr.msra.gmra.mrb[0].mxu0 %v84_v24 }
  0x99   :  { %v89_v25 = vpop.permute.xlu0 %88 }
 0x164   :  { %v125_v26 = vpop.f32.mrb[0].mxu0 }
 0x165   :  { %v126_v27 = vadd.f32 %v125_v26, %v89_v25  ;;  %v127_v28 = vpop.f32.mrb[1].mxu0 }
 0x166   :  { %v128_v29 = vadd.f32 %v127_v28, %v89_v25  ;;  %v129_v30 = vpop.f32.mrb[2].mxu0 }
 0x167   :  { %132 = vst [vmem:[%s205_s3] sm:$0xff] %v126_v27  ;;  %v130_v31 = vpop.f32.mrb[3].mxu0 }
 0x168   :  { %134 = vst.msk [vmem:[%s205_s3 + $0x8] sm:$0xff] %vm133_vm3, %v128_v29 }

</bundles_post_ra>
